<compile_context>
chip_gen: v5e
topology: v5e:2x2
jax: 0.10.0
libtpu: 0.0.40
codegen_flags: <defaults>
</compile_context>

<pallas_src>
import functools

import jax
import jax.numpy as jnp
from jax import lax
from jax.experimental import pallas as pl
from jax.experimental.pallas import tpu as pltpu


def _round_up(x, m):
    return ((x + m - 1) // m) * m


def _sublane_multiple(dtype):
    # Native sublane packing: 8 rows for 4-byte, 16 for 2-byte, 32 for 1-byte dtypes.
    return max(8, 32 // jnp.dtype(dtype).itemsize)


def _vmem_params():
    """Generation-aware (scoped VMEM limit, working-set budget) in bytes."""
    cap = None
    try:
        cap = getattr(pltpu.get_tpu_info(), "vmem_capacity_bytes", None)
    except Exception:
        cap = None
    if not cap:
        cap = 64 * 1024 * 1024  # conservative default (v7x per-TensorCore VMEM)
    # 128 MiB parts (v5e/v6e) -> 96 MiB scoped limit; 64 MiB parts (v7x) -> 48 MiB.
    vmem_limit = int(min(cap * 3 // 4, 96 * 1024 * 1024))
    work_budget = vmem_limit * 3 // 4  # headroom for compiler temporaries / spills
    return vmem_limit, work_budget


def _auto_tile_n(n, c, itemsize, sub, work_budget):
    # Approximate per-row VMEM working set:
    #   2 * C * itemsize : double-buffered pipelined input block
    #   2 * C * itemsize : native-dtype intermediates ((x - m), one-hot select)
    #   3 * C * 4        : f32 / i32 intermediates (exp arg / exp, class iota)
    per_row = 4 * c * itemsize + 12 * c
    rows = max(sub, (work_budget // max(per_row, 1)) // sub * sub)
    # >= 2 grid steps whenever the batch allows it (v7x megacore needs >=2
    # "parallel" steps; costs nothing on v5e/v6e).
    rows = min(rows, max(sub, _round_up(-(-n // 2), sub)))
    rows = min(rows, _round_up(n, sub))
    return max(sub, rows)


def _label_smoothing_kernel(x_ref, t_ref, out_ref, *, confidence, smoothing,
                            n_classes, n_rows, tile_n):
    # x_ref: (tile_n, C) logits (native dtype); t_ref: (tile_n, 1) int32;
    # out_ref: (1, 128) f32 -- this tile's partial loss sum, splat across lanes.
    x = x_ref[...]
    tgt = t_ref[...]

    # Numerically stable logsumexp over the class (lane) axis.  Row max in the
    # native dtype; the only full-tile f32 cast is fused into the exp argument.
    m = jnp.max(x, axis=-1, keepdims=True)               # (tn, 1) native
    mf = m.astype(jnp.float32)
    d = (x - m).astype(jnp.float32)                      # (tn, C) f32
    se = jnp.sum(jnp.exp(d), axis=-1, keepdims=True)     # (tn, 1)
    lse = mf + jnp.log(se)

    # sum_c x = sum_c (x - m) + C * m   (re-uses d; avoids a second full-tile cast)
    x_sum = jnp.sum(d, axis=-1, keepdims=True) + jnp.float32(n_classes) * mf

    # Target logit via one-hot select + lane sum (exact: all other terms are 0),
    # done on the native-dtype tile.
    cls = lax.broadcasted_iota(jnp.int32, x.shape, 1)
    x_tgt = jnp.sum(jnp.where(cls == tgt, x, jnp.zeros_like(x)),
                    axis=-1, keepdims=True).astype(jnp.float32)

    # loss_row = lse - confidence * x_tgt - (smoothing / C) * sum_c x
    #          = confidence * nll + smoothing * smooth_loss   (confidence+smoothing==1)
    loss = (lse
            - jnp.float32(confidence) * x_tgt
            - jnp.float32(smoothing / n_classes) * x_sum)     # (tn, 1)

    # Ragged last tile: mask rows past the true batch size (x is never padded
    # in HBM; rows beyond N in this block hold unspecified data).
    row = (pl.program_id(0) * tile_n
           + lax.broadcasted_iota(jnp.int32, (tile_n, 1), 0))
    loss = jnp.where(row < n_rows, loss, jnp.zeros_like(loss))

    # Per-tile partial sum, stored as one full 128-lane row (lane-dense,
    # unmasked store).  The wrapper reads lane 0 of each tile row.
    tile_sum = jnp.sum(loss, axis=0, keepdims=True)           # (1, 1)
    out_ref[...] = jnp.broadcast_to(tile_sum, (1, 128))

    # TODO(synk): if profiling shows the VALU slot saturated on v7x, offload the
    # two lane reductions to the idle MXU via jnp.dot against a ones(C, 128) matrix.


def label_smoothing_loss(x, target, smoothing=0.1, *, tile_n=None):
    """x: [N, C] float logits (f32 or bf16); target: [N] int class indices.

    Returns a scalar f32 loss (mean over the batch), matching PyTorch
    LabelSmoothing.forward.  Feeding bf16 logits halves HBM traffic and is the
    primary lever on v5e/v6e (the kernel is HBM-BW bound there); accumulation
    inside the kernel is f32.
    """
    n, c = x.shape
    confidence = 1.0 - smoothing
    itemsize = jnp.dtype(x.dtype).itemsize
    sub = _sublane_multiple(x.dtype)

    vmem_limit, work_budget = _vmem_params()
    if tile_n is None:
        tile_n = _auto_tile_n(n, c, itemsize, sub, work_budget)
    tile_n = max(sub, (int(tile_n) // sub) * sub)

    num_tiles = (n + tile_n - 1) // tile_n
    target2d = target.astype(jnp.int32).reshape(n, 1)

    kernel = functools.partial(
        _label_smoothing_kernel,
        confidence=confidence,
        smoothing=smoothing,
        n_classes=c,
        n_rows=n,
        tile_n=tile_n,
    )

    partial_sums = pl.pallas_call(
        kernel,
        out_shape=jax.ShapeDtypeStruct((1, num_tiles * 128), jnp.float32),
        grid_spec=pltpu.PrefetchScalarGridSpec(
            num_scalar_prefetch=0,
            grid=(num_tiles,),
            in_specs=[
                pl.BlockSpec((tile_n, c), lambda i: (i, 0)),
                pl.BlockSpec((tile_n, 1), lambda i: (i, 0)),
            ],
            out_specs=pl.BlockSpec((1, 128), lambda i: (0, i)),
        ),
        compiler_params=pltpu.CompilerParams(
            dimension_semantics=("parallel",),
            vmem_limit_bytes=vmem_limit,
        ),
    )(x, target2d)

    # Final mean over valid rows (masked rows contribute exactly 0).
    per_tile = partial_sums.reshape(num_tiles, 128)[:, 0]
    return jnp.sum(per_tile) / jnp.float32(n)


def _reference(x, target, smoothing):
    confidence = 1.0 - smoothing
    logprobs = jax.nn.log_softmax(x.astype(jnp.float32), axis=-1)
    nll = -jnp.take_along_axis(logprobs, target[:, None], axis=-1)[:, 0]
    smooth = -jnp.mean(logprobs, axis=-1)
    return jnp.mean(confidence * nll + smoothing * smooth)


if __name__ == "__main__":
    key = jax.random.PRNGKey(0)
    k1, k2, k3, k4, k5, k6 = jax.random.split(key, 6)
    smoothing = 0.1

    # Case 1: f32 logits, batch a multiple of the sublane tile (2 parallel steps).
    N1, C1 = 16, 128
    x1 = jax.random.normal(k1, (N1, C1), dtype=jnp.float32)
    t1 = jax.random.randint(k2, (N1,), 0, C1, dtype=jnp.int32)
    loss1 = jax.block_until_ready(label_smoothing_loss(x1, t1, smoothing=smoothing))
    ref1 = _reference(x1, t1, smoothing)
    assert jnp.allclose(loss1, ref1, atol=1e-5, rtol=1e-5), (loss1, ref1)

    # Case 2: ragged batch (not a multiple of the tile) -> in-kernel row masking.
    N2, C2 = 12, 128
    x2 = jax.random.normal(k3, (N2, C2), dtype=jnp.float32)
    t2 = jax.random.randint(k4, (N2,), 0, C2, dtype=jnp.int32)
    loss2 = jax.block_until_ready(label_smoothing_loss(x2, t2, smoothing=smoothing))
    ref2 = _reference(x2, t2, smoothing)
    assert jnp.allclose(loss2, ref2, atol=1e-5, rtol=1e-5), (loss2, ref2)

    # Case 3: ragged batch + class count that is not a multiple of 128.
    N3, C3 = 50, 96
    x3 = jax.random.normal(k5, (N3, C3), dtype=jnp.float32)
    t3 = jax.random.randint(k6, (N3,), 0, C3, dtype=jnp.int32)
    loss3 = jax.block_until_ready(label_smoothing_loss(x3, t3, smoothing=smoothing))
    ref3 = _reference(x3, t3, smoothing)
    assert jnp.allclose(loss3, ref3, atol=1e-5, rtol=1e-5), (loss3, ref3)

    # Case 4: bf16 logits at the pallas_call boundary (halves HBM traffic).
    x4 = x1.astype(jnp.bfloat16)
    loss4 = jax.block_until_ready(label_smoothing_loss(x4, t1, smoothing=smoothing))
    ref4 = _reference(x4.astype(jnp.float32), t1, smoothing)
    assert jnp.allclose(loss4, ref4, atol=2e-2, rtol=2e-2), (loss4, ref4)

    print("KERNEL_OK")
</pallas_src>

<mosaic_0001>
module attributes {stable_mosaic.version = 11 : i64} {
  func.func @_label_smoothing_kernel(%arg0: i32, %arg1: memref<8x128xf32, #tpu.memory_space<vmem>>, %arg2: memref<8x1xi32, #tpu.memory_space<vmem>>, %arg3: memref<1x128xf32, #tpu.memory_space<vmem>>) attributes {dimension_semantics = [#tpu.dimension_semantics<parallel>], iteration_bounds = array<i64: 2>, scalar_prefetch = 0 : i64, scratch_operands = 0 : i64, tpu.core_type = #tpu.core_type<tc>, window_params = [{transform_indices = @transform_0, window_bounds = array<i64: 8, 128>}, {transform_indices = @transform_1, window_bounds = array<i64: 8, 1>}, {transform_indices = @transform_2, window_bounds = array<i64: 1, 128>}]} {
    %c0 = arith.constant 0 : index
    %c0_0 = arith.constant 0 : index
    %0 = vector.load %arg1[%c0, %c0_0] : memref<8x128xf32, #tpu.memory_space<vmem>>, vector<8x128xf32>
    %c0_1 = arith.constant 0 : index
    %c0_2 = arith.constant 0 : index
    %1 = vector.load %arg2[%c0_1, %c0_2] : memref<8x1xi32, #tpu.memory_space<vmem>>, vector<8x1xi32>
    %cst = arith.constant dense<0xFF800000> : vector<8xf32>
    %2 = vector.multi_reduction <maximumf>, %0, %cst [1] : vector<8x128xf32> to vector<8xf32>
    %3 = vector.shape_cast %2 : vector<8xf32> to vector<8x1xf32>
    %4 = vector.broadcast %3 : vector<8x1xf32> to vector<8x128xf32>
    %5 = arith.subf %0, %4 : vector<8x128xf32>
    %6 = math.exp %5 : vector<8x128xf32>
    %cst_3 = arith.constant dense<0.000000e+00> : vector<8xf32>
    %7 = vector.multi_reduction <add>, %6, %cst_3 [1] : vector<8x128xf32> to vector<8xf32>
    %8 = vector.shape_cast %7 : vector<8xf32> to vector<8x1xf32>
    %9 = math.log %8 : vector<8x1xf32>
    %10 = arith.addf %3, %9 : vector<8x1xf32>
    %cst_4 = arith.constant dense<0.000000e+00> : vector<8xf32>
    %11 = vector.multi_reduction <add>, %5, %cst_4 [1] : vector<8x128xf32> to vector<8xf32>
    %12 = vector.shape_cast %11 : vector<8xf32> to vector<8x1xf32>
    %cst_5 = arith.constant 1.280000e+02 : f32
    %13 = vector.broadcast %cst_5 : f32 to vector<8x1xf32>
    %14 = arith.mulf %13, %3 : vector<8x1xf32>
    %15 = arith.addf %12, %14 : vector<8x1xf32>
    %16 = tpu.iota {dimensions = array<i32: 1>} : vector<8x128xi32>
    %17 = vector.broadcast %1 : vector<8x1xi32> to vector<8x128xi32>
    %18 = arith.cmpi eq, %16, %17 : vector<8x128xi32>
    %cst_6 = arith.constant 0.000000e+00 : f32
    %19 = vector.broadcast %cst_6 : f32 to vector<8x128xf32>
    %20 = arith.select %18, %0, %19 : vector<8x128xi1>, vector<8x128xf32>
    %cst_7 = arith.constant dense<0.000000e+00> : vector<8xf32>
    %21 = vector.multi_reduction <add>, %20, %cst_7 [1] : vector<8x128xf32> to vector<8xf32>
    %22 = vector.shape_cast %21 : vector<8xf32> to vector<8x1xf32>
    %cst_8 = arith.constant 0.899999976 : f32
    %23 = vector.broadcast %cst_8 : f32 to vector<8x1xf32>
    %24 = arith.mulf %23, %22 : vector<8x1xf32>
    %25 = arith.subf %10, %24 : vector<8x1xf32>
    %cst_9 = arith.constant 7.812500e-04 : f32
    %26 = vector.broadcast %cst_9 : f32 to vector<8x1xf32>
    %27 = arith.mulf %26, %15 : vector<8x1xf32>
    %28 = arith.subf %25, %27 : vector<8x1xf32>
    %c8_i32 = arith.constant 8 : i32
    %29 = arith.muli %arg0, %c8_i32 : i32
    %30 = tpu.iota {dimensions = array<i32: 0>} : vector<8x1xi32>
    %31 = vector.broadcast %29 : i32 to vector<8x1xi32>
    %32 = arith.addi %31, %30 : vector<8x1xi32>
    %c16_i32 = arith.constant 16 : i32
    %33 = vector.broadcast %c16_i32 : i32 to vector<8x1xi32>
    %34 = arith.cmpi slt, %32, %33 : vector<8x1xi32>
    %cst_10 = arith.constant 0.000000e+00 : f32
    %35 = vector.broadcast %cst_10 : f32 to vector<8x1xf32>
    %36 = arith.select %34, %28, %35 : vector<8x1xi1>, vector<8x1xf32>
    %cst_11 = arith.constant dense<0.000000e+00> : vector<1xf32>
    %37 = vector.multi_reduction <add>, %36, %cst_11 [0] : vector<8x1xf32> to vector<1xf32>
    %38 = vector.shape_cast %37 : vector<1xf32> to vector<1x1xf32>
    %39 = vector.shape_cast %38 : vector<1x1xf32> to vector<1x1xf32>
    %40 = vector.broadcast %39 : vector<1x1xf32> to vector<1x128xf32>
    %c0_12 = arith.constant 0 : index
    %c0_13 = arith.constant 0 : index
    %41 = vector.load %arg3[%c0_12, %c0_13] : memref<1x128xf32, #tpu.memory_space<vmem>>, vector<1x128xf32>
    tpu.vector_store %arg3[%c0_12, %c0_13], %40 {strides = array<i32>} : memref<1x128xf32, #tpu.memory_space<vmem>>, vector<1x128xf32>,
    return
  }
  func.func @transform_0(%arg0: i32) -> (i32, i32) {
    %c0_i32 = arith.constant 0 : i32
    %c0_i32_0 = arith.constant 0 : i32
    return %arg0, %c0_i32 : i32, i32
  }
  func.func @transform_1(%arg0: i32) -> (i32, i32) {
    %c0_i32 = arith.constant 0 : i32
    %c0_i32_0 = arith.constant 0 : i32
    return %arg0, %c0_i32 : i32, i32
  }
  func.func @transform_2(%arg0: i32) -> (i32, i32) {
    %c0_i32 = arith.constant 0 : i32
    %c0_i32_0 = arith.constant 0 : i32
    return %c0_i32, %arg0 : i32, i32
  }
}

</mosaic_0001>

<bundles_post_ra>
// kernel: tpu_custom_call.1
= control target key start
LH: loop header
LB: loop body
LE: loop exit
PB: predicated region body
PF: predicated region fallthrough
CT: control target
= control target key end

     0   :  { %7 = vsyncpa [#allocation3], 0  ;;  %s501_s0 = inlined_call_operand.vmem [shape: f32[16,128], index: 0, kind: input, shape index: {}]   ;;  %s502_s1 = inlined_call_operand.vmem [shape: s32[16,1], index: 1, kind: input, shape index: {}]   ;;  %s503_s2 = inlined_call_operand.hbm [shape: f32[1,256], index: 2, kind: output, shape index: {}]  }
   0x1   :  { %9 = vsyncpa [#allocation3 + $0x1], 0  ;;  %s412_s9 = smov 0   ;;  %s414_s10 = smov 0  }
   0x2   :  { %s416_s11 = smov 0   ;;  %s418_s12 = smov 0  }
   0x3 LB: > { %s433_s13 = sadd.s32 4294967295, %s394_s12   ;;  %s278_s14 = sadd.s32 4294967294, %s394_s12   ;;  %s394_s12 = sphi %s418_s12, %s509_s12   ;;  %s390_s11 = sphi %s416_s11, %s508_s11   ;;  %s386_s10 = sphi %s414_s10, %s507_s10   ;;  %s382_s9 = sphi %s412_s9, %s506_s9  }
   0x4   : > { %s437_s15 = sadd.s32 1, %s394_s12   ;;  %s74_s16 = sadd.s32 1, %s390_s11 }
   0x5   : > { %s71_s17 = ssub.s32 %s394_s12, %s437_s15  ;;  %p84_p0 = scmp.ne.s32.totalorder %s390_s11, %s386_s10 }
   0x6   : > { %p72_p1 = scmp.eq.s32.totalorder %s71_s17, 0  ;;  %p85_p2 = scmp.eq.s32.totalorder %s433_s13, 1 }
   0x7   : > { %p90_p3 = scmp.ne.s32.totalorder %s386_s10, %s382_s9  ;;  %p91_p4 = scmp.eq.s32.totalorder %s278_s14, 1 }
   0x8   : > { %s448_s18 = scalar_select %p72_p1, %s390_s11, %s74_s16  }
   0x9   : > { %p450_p5 = por %p85_p2, %p84_p0  ;;  %p454_p6 = por %p91_p4, %p90_p3 }
   0xa   : > { %p281_p7 = scmp.ge.s32.totalorder %s394_s12, 1  ;;  %p123_p8 = scmp.lt.s32.totalorder %s394_s12, 3 }
   0xc   : > { %p124_p9 = pnand %p281_p7, %p123_p8 }
   0xd   : > { %p147_p10 = scmp.lt.s32.totalorder (!%p124_p9), %s433_s13, 1  ;;  %s284_s29 = sshll.u32 (!%p124_p9), %s433_s13, 3 }
   0xe   : > { %127 = sbr.rel (%p124_p9) target bundleno = 299 (0x12b), region = 28  ;;  %s145_s30 = sand.u32 (!%p124_p9), 1, %s386_s10  }
   0xf   : > { %s207_s5 = scalar_lea.hbm (!%p124_p9), %s503_s2, %s433_s13  ;;  %s146_s6 = scalar_lea.vmem (!%p124_p9), [#allocation2], %s145_s30 }
  0x10   : > { %s209_s7 = sshll.u32 (!%p124_p9), %s146_s6, 4  ;;  %s211_s8 = sshll.u32 (!%p124_p9), %s207_s5, 4  ;;  %s210_s7 = int_to_ptr.vmem [resolvable:$true] %s209_s7  ;;  %s212_s8 = int_to_ptr.hbm [resolvable:$true] %s211_s8 }
  0x11   : > { %s199_s14 = scalar_lea.sflag (!%p124_p9), [#allocation3], %s145_s30  ;;  %s346_s16 = sshra.s32 (!%p124_p9), %s212_s8, 4  ;;  %s347_s16 = int_to_ptr.hbm [resolvable:$true] %s346_s16 }
  0x12   : > { %s348_s17 = scalar_lea.hbm (!%p124_p9), %s347_s16, 1  ;;  %p353_p0 = scmp.lt.s32.totalorder (!%p124_p9), %s347_s16, %s503_s2 }
  0x13   : > { %v396_v0 = vmov 0   ;;  %s148_s21 = scalar_select %p147_p10, %s433_s13, 1  ;;  %v171_v7 = vlaneseq  ;;  %v187_v15 = vstv %s284_s29 }
  0x14   : > { %327 = vset.pattern.permute.xlu0 %v396_v0  ;;  %p349_p11 = scmp.ne.s32.totalorder %s347_s16, %s348_s17  ;;  %s352_s13 = scalar_lea.hbm %s503_s2, 2 }
  0x15   : > { %s282_s22 = sshll.u32 %s148_s21, 3  ;;  %v172_v8 = vand.u32 127, %v171_v7  ;;  %v186_v12 = vshrl.u32 %v171_v7, 7  ;;  %p354_p1 = scmp.lt.s32.totalorder %s352_s13, %s348_s17 }
  0x16   : > { %s150_s25 = scalar_lea.vmem %s501_s0, %s282_s22  ;;  %s154_s28 = scalar_lea.vmem %s502_s1, %s282_s22 }
  0x17   : > { %v155_v1 = vld [vmem:[%s150_s25] sm:$0xff]  ;;  %v188_v20 = vadd.s32 %v187_v15, %v186_v12  ;;  %p350_p12 = pnand %p349_p11, %p450_p5  ;;  %p355_p2 = por %p354_p1, %p353_p0 }
  0x18   : > { %157 = vmax.xlane.f32.xlu0 %v155_v1  ;;  %v156_v2 = vld [vmem:[%s154_s28] sm:$0xff] }
  0x19   : > { %vm189_vm1 = vcmp.lt.s32.totalorder %v188_v20, 16  ;;  %p351_p13 = pneg %p350_p12 }
  0x1b   : > { %p356_p3 = pnand %p355_p2, %p351_p13 }
  0x2c   : > { %174 = vperm.xlu0 %327, %v156_v2  }
  0x8b   : > { %v158_v3 = vpop.xlane.xlu0 %157 }
  0x8c   : > { %v159_v4 = vsub.f32 %v155_v1, %v158_v3  ;;  %v169_v14 = vmul.f32 128.0, %v158_v3 }
  0x8e   : > { %v160_v5 = vmul.f32 1.442695, %v159_v4 }
  0x90   : > { %328 = vpow2.f32 %v160_v5 }
  0x96   : > { %v329_v6 = vpop.eup %328 }
  0x97   : > { %162 = vadd.xlane.f32.xlu1 %v329_v6 }
  0x9e   : > { %v175_v9 = vpop.permute.xlu0 %174 }
  0x9f   : > { %vm176_vm0 = vcmp.eq.s32.totalorder %v172_v8, %v175_v9  ;;  %167 = vadd.xlane.f32.xlu1 %v159_v4 }
  0xa0   : > { %v177_v10 = vsel %vm176_vm0, %v155_v1, 0.0 }
  0xa1   : > { %178 = vadd.xlane.f32.xlu2 %v177_v10 }
 0x10a   : > { %v163_v11 = vpop.xlane.xlu1 %162 }
 0x10b   : > { %330 = vlog2.f32 %v163_v11 }
 0x111   : > { %v331_v13 = vpop.eup %330 }
 0x112   : > { %v165_v16 = vmul.f32 0.6931472, %v331_v13  ;;  %v168_v17 = vpop.xlane.xlu1 %167 }
 0x113   : > { %v170_v18 = vadd.f32 %v169_v14, %v168_v17 }
 0x114   : > { %v166_v19 = vadd.f32 %v165_v16, %v158_v3  ;;  %v179_v21 = vpop.xlane.xlu2 %178 }
 0x115   : > { %v180_v22 = vmul.f32 0.9, %v179_v21  ;;  %v182_v23 = vmul.f32 0.00078125, %v170_v18 }
 0x117   : > { %v181_v24 = vsub.f32 %v166_v19, %v180_v22 }
 0x119   : > { %v183_v25 = vsub.f32 %v181_v24, %v182_v23 }
 0x11b   : > { %v190_v26 = vsel %vm189_vm1, %v183_v25, 0.0 }
 0x11c   : > { %v191_v27 = vrot.slane %v190_v26, 4 }
 0x11e   : > { %v192_v28 = vadd.f32 %v191_v27, %v190_v26 }
 0x120   : > { %v193_v29 = vrot.slane %v192_v28, 2 }
 0x122   : > { %v194_v30 = vadd.f32 %v193_v29, %v192_v28 }
 0x124   : > { %v195_v31 = vrot.slane %v194_v30, 1 }
 0x126   : > { %v196_v32 = vadd.f32 %v195_v31, %v194_v30 }
 0x128   : > { %197 = vst [vmem:[%s146_s6] sm:$0x1] %v196_v32 }
 0x129   : > { %359 = shalt.err (!%p356_p3)
}
 0x12a   : > { %287 = dma.vmem_to_hbm [thread:$0]  (%p450_p5), %s210_s7, 16, %s212_s8, %s199_s14  }
 0x12b PF: > { %p293_p4 = scmp.ge.s32.totalorder %s394_s12, 2  ;;  %s223_s25 = sand.u32 1, %s382_s9  }
 0x12c   : > { %s224_s26 = scalar_lea.sflag [#allocation3], %s223_s25 }
 0x12d   : > { %p290_p7 = pnand %p293_p4, %p454_p6 }
 0x12f   : > { %p291_p8 = pneg %p290_p7 }
 0x131   : > { %377 = dma.done.wait (%p291_p8), %s224_s26, 16  }
 0x132   : > { %379 = vsyncadd (%p291_p8), %s224_s26, 4294967280  ;;  %p12_p9 = scmp.ge.s32.totalorder %s437_s15, 4   ;;  %s506_s9 = smov %s386_s10 }
 0x133   : > { %s507_s10 = smov %s390_s11  ;;  %s508_s11 = smov %s448_s18 }
 0x134   : > { %s509_s12 = smov %s437_s15  ;;  %14 = sbr.rel (!%p12_p9) target bundleno = 3 (0x3), region = 66 }
 0x139   :  { %229 = vsyncpa [#allocation3], 1 }
 0x13a   :  { %231 = vsyncpa [#allocation3 + $0x1], 1 }

</bundles_post_ra>
